<compile_context>
chip_gen: v7x
topology: tpu7x:2x2x1
jax: 0.10.0
libtpu: 0.0.40
codegen_flags: <defaults>
</compile_context>

<pallas_src>
import jax
import jax.numpy as jnp
from jax import lax
from jax.experimental import pallas as pl
from jax.experimental.pallas import tpu as pltpu


# ---------------------------------------------------------------------------
# Kernels
# ---------------------------------------------------------------------------
def _cross_kernel_lowrank(x0_ref, x_ref, wu_ref, wv_ref, bias_ref, out_ref):
    """Two-matmul low-rank path: t = x @ Wu.T ; proj = t @ Wv.T."""
    x = x_ref[...]                       # (TB, D)
    x0 = x0_ref[...]                     # (TB, D)
    # Contract x's D axis against Wu's D axis (== x @ Wu.T), no transpose op.
    t = lax.dot_general(x, wu_ref[...], (((1,), (1,)), ((), ())),
                        preferred_element_type=jnp.float32)          # (TB, R)
    # Contract t's R axis against Wv's R axis (== t @ Wv.T).
    proj = lax.dot_general(t, wv_ref[...], (((1,), (1,)), ((), ())),
                           preferred_element_type=jnp.float32)       # (TB, D)
    out = (x0.astype(jnp.float32) * proj
           + x.astype(jnp.float32)
           + bias_ref[...].astype(jnp.float32))
    out_ref[...] = out.astype(out_ref.dtype)


def _cross_kernel_fused(x0_ref, x_ref, w_ref, bias_ref, out_ref):
    """Fused path: proj = x @ W_eff, with W_eff = Wu.T @ Wv.T precomputed."""
    x = x_ref[...]                       # (TB, D)
    x0 = x0_ref[...]                     # (TB, D)
    proj = jnp.dot(x, w_ref[...], preferred_element_type=jnp.float32)  # (TB, D)
    out = (x0.astype(jnp.float32) * proj
           + x.astype(jnp.float32)
           + bias_ref[...].astype(jnp.float32))
    out_ref[...] = out.astype(out_ref.dtype)


# ---------------------------------------------------------------------------
# Wrapper
# ---------------------------------------------------------------------------
def _pick_batch_tile(B, D, weight_bytes, itemsize, vmem_budget_bytes):
    # x0, x, out streams, each double-buffered by the Pallas pipeline; weights
    # are also double-buffer-allocated even though they are fetched once.
    per_row = 3 * 2 * D * itemsize
    avail = max(vmem_budget_bytes - 2 * weight_bytes, per_row * 8)
    tb = max(8, min(int(avail // per_row), 4096))
    return tb


def low_rank_cross_layer(x0, x, Wu, Wv, bias, *, block_batch=None, fuse=None,
                         vmem_budget_bytes=48 * 1024 * 1024):
    """x0, x: (B, D); Wu: (R, D); Wv: (D, R); bias: (D,)."""
    B, D = x.shape
    R = Wu.shape[0]
    itemsize = jnp.dtype(x.dtype).itemsize

    # Fuse the two lane-sparse matmuls into one lane-dense (D, D) matmul when
    # D is small (or the rank is not actually "low") — recovers MXU depth.
    if fuse is None:
        fuse = (2 * R >= D) or (D <= 256)

    bias2d = bias.reshape(1, D)

    if fuse:
        # W_eff[d, e] = sum_r Wu[r, d] * Wv[e, r]  =>  x @ W_eff == (x@Wu.T)@Wv.T
        w_eff = lax.dot_general(Wu, Wv, (((0,), (1,)), ((), ())),
                                preferred_element_type=jnp.float32).astype(x.dtype)
        weight_bytes = (D * D + D) * itemsize
        flops = 2 * B * D * D + 3 * B * D
    else:
        weight_bytes = (2 * R * D + D) * itemsize
        flops = 4 * B * D * R + 3 * B * D

    # --- batch tile selection (VMEM-budget aware; multiple of 8) -----------
    if block_batch is None:
        block_batch = _pick_batch_tile(B, D, weight_bytes, itemsize,
                                       vmem_budget_bytes)
    tb = min(int(block_batch), B)
    if tb < B:
        tb = max(8, (tb // 8) * 8)
        if tb >= B:
            tb = B
    grid = (pl.cdiv(B, tb),)

    act_spec = pl.BlockSpec((tb, D), lambda i: (i, 0))       # batch-tiled
    bias_spec = pl.BlockSpec((1, D), lambda i: (0, 0))       # resident
    out_spec = pl.BlockSpec((tb, D), lambda i: (i, 0))

    cost = pl.CostEstimate(
        flops=flops,
        transcendentals=0,
        bytes_accessed=3 * B * D * itemsize + weight_bytes,
    )
    cparams = pltpu.CompilerParams(
        dimension_semantics=("parallel",),
        vmem_limit_bytes=min(vmem_budget_bytes + (8 << 20), 96 << 20),
    )

    # NOTE: input_output_aliases={1: 0} (alias x with out) would save one B*D
    # HBM buffer but requires donating x; skipped to keep x valid for callers.

    if fuse:
        in_specs = [
            act_spec,                                        # x0
            act_spec,                                        # x
            pl.BlockSpec((D, D), lambda i: (0, 0)),          # W_eff (resident)
            bias_spec,                                       # bias
        ]
        return pl.pallas_call(
            _cross_kernel_fused,
            out_shape=jax.ShapeDtypeStruct((B, D), x.dtype),
            grid=grid,
            in_specs=in_specs,
            out_specs=out_spec,
            compiler_params=cparams,
            cost_estimate=cost,
        )(x0, x, w_eff, bias2d)
    else:
        in_specs = [
            act_spec,                                        # x0
            act_spec,                                        # x
            pl.BlockSpec((R, D), lambda i: (0, 0)),          # Wu (resident)
            pl.BlockSpec((D, R), lambda i: (0, 0)),          # Wv (resident)
            bias_spec,                                       # bias
        ]
        return pl.pallas_call(
            _cross_kernel_lowrank,
            out_shape=jax.ShapeDtypeStruct((B, D), x.dtype),
            grid=grid,
            in_specs=in_specs,
            out_specs=out_spec,
            compiler_params=cparams,
            cost_estimate=cost,
        )(x0, x, Wu, Wv, bias2d)


def _reference(x0, x, Wu, Wv, bias):
    return x0 * ((x @ Wu.T) @ Wv.T) + x + bias


if __name__ == "__main__":
    key = jax.random.PRNGKey(0)
    k0, k1, k2, k3 = jax.random.split(key, 4)

    batch = 64
    input_dim = 128      # lane-dense (multiple of 128)
    rank = 16

    x0 = jax.random.normal(k0, (batch, input_dim), dtype=jnp.float32)
    x = jax.random.normal(k1, (batch, input_dim), dtype=jnp.float32)

    # Deterministic parameter init (Kaiming-uniform-like scale, synthetic values).
    Wu = jax.random.uniform(k2, (rank, input_dim), dtype=jnp.float32,
                            minval=-1.0 / jnp.sqrt(input_dim),
                            maxval=1.0 / jnp.sqrt(input_dim))
    Wv = jax.random.uniform(k3, (input_dim, rank), dtype=jnp.float32,
                            minval=-1.0 / jnp.sqrt(rank),
                            maxval=1.0 / jnp.sqrt(rank))
    bias = jnp.zeros((input_dim,), dtype=jnp.float32)

    ref = _reference(x0, x, Wu, Wv, bias)

    # Fused (single lane-dense matmul) path; block_batch=16 -> grid of 4 tiles.
    out_fused = low_rank_cross_layer(x0, x, Wu, Wv, bias, block_batch=16)
    out_fused = jax.block_until_ready(out_fused)
    assert jnp.allclose(out_fused, ref, atol=1e-4, rtol=1e-4), "fused path mismatch"

    # Explicit low-rank two-matmul path (used when R << D at real model sizes).
    out_lr = low_rank_cross_layer(x0, x, Wu, Wv, bias, block_batch=16, fuse=False)
    out_lr = jax.block_until_ready(out_lr)
    assert jnp.allclose(out_lr, ref, atol=1e-4, rtol=1e-4), "low-rank path mismatch"

    print("KERNEL_OK")
</pallas_src>

<mosaic_0001>
module attributes {stable_mosaic.version = 11 : i64} {
  func.func @_cross_kernel_fused(%arg0: i32, %arg1: memref<16x128xf32, #tpu.memory_space<vmem>>, %arg2: memref<16x128xf32, #tpu.memory_space<vmem>>, %arg3: memref<128x128xf32, #tpu.memory_space<vmem>>, %arg4: memref<1x128xf32, #tpu.memory_space<vmem>>, %arg5: memref<16x128xf32, #tpu.memory_space<vmem>>) attributes {dimension_semantics = [#tpu.dimension_semantics<parallel>], iteration_bounds = array<i64: 4>, scalar_prefetch = 0 : i64, scratch_operands = 0 : i64, tpu.core_type = #tpu.core_type<tc>, window_params = [{transform_indices = @transform_0, window_bounds = array<i64: 16, 128>}, {transform_indices = @transform_1, window_bounds = array<i64: 16, 128>}, {pipeline_mode = #tpu.pipeline_mode<synchronous>, transform_indices = @transform_2, window_bounds = array<i64: 128, 128>}, {pipeline_mode = #tpu.pipeline_mode<synchronous>, transform_indices = @transform_3, window_bounds = array<i64: 1, 128>}, {transform_indices = @transform_4, window_bounds = array<i64: 16, 128>}]} {
    %c0 = arith.constant 0 : index
    %c0_0 = arith.constant 0 : index
    %0 = vector.load %arg2[%c0, %c0_0] : memref<16x128xf32, #tpu.memory_space<vmem>>, vector<16x128xf32>
    %c0_1 = arith.constant 0 : index
    %c0_2 = arith.constant 0 : index
    %1 = vector.load %arg1[%c0_1, %c0_2] : memref<16x128xf32, #tpu.memory_space<vmem>>, vector<16x128xf32>
    %c0_3 = arith.constant 0 : index
    %c0_4 = arith.constant 0 : index
    %2 = vector.load %arg3[%c0_3, %c0_4] : memref<128x128xf32, #tpu.memory_space<vmem>>, vector<128x128xf32>
    %cst = arith.constant dense<0.000000e+00> : vector<16x128xf32>
    %3 = tpu.matmul %0, %2, %cst {dimension_numbers = #tpu.dot_dimension_numbers<[1], [0], [0], [1], [0, 0, 1, 1], [], []>} : vector<16x128xf32>, vector<128x128xf32>, vector<16x128xf32> -> vector<16x128xf32>
    %4 = arith.mulf %1, %3 : vector<16x128xf32>
    %5 = arith.addf %4, %0 : vector<16x128xf32>
    %c0_5 = arith.constant 0 : index
    %c0_6 = arith.constant 0 : index
    %6 = vector.load %arg4[%c0_5, %c0_6] : memref<1x128xf32, #tpu.memory_space<vmem>>, vector<1x128xf32>
    %7 = vector.broadcast %6 : vector<1x128xf32> to vector<16x128xf32>
    %8 = arith.addf %5, %7 : vector<16x128xf32>
    %c0_7 = arith.constant 0 : index
    %c0_8 = arith.constant 0 : index
    %9 = vector.load %arg5[%c0_7, %c0_8] : memref<16x128xf32, #tpu.memory_space<vmem>>, vector<16x128xf32>
    tpu.vector_store %arg5[%c0_7, %c0_8], %8 {strides = array<i32>} : memref<16x128xf32, #tpu.memory_space<vmem>>, vector<16x128xf32>,
    return
  }
  func.func @transform_0(%arg0: i32) -> (i32, i32) {
    %c0_i32 = arith.constant 0 : i32
    %c0_i32_0 = arith.constant 0 : i32
    return %arg0, %c0_i32 : i32, i32
  }
  func.func @transform_1(%arg0: i32) -> (i32, i32) {
    %c0_i32 = arith.constant 0 : i32
    %c0_i32_0 = arith.constant 0 : i32
    return %arg0, %c0_i32 : i32, i32
  }
  func.func @transform_2(%arg0: i32) -> (i32, i32) {
    %c0_i32 = arith.constant 0 : i32
    %c0_i32_0 = arith.constant 0 : i32
    %c0_i32_1 = arith.constant 0 : i32
    return %c0_i32, %c0_i32_0 : i32, i32
  }
  func.func @transform_3(%arg0: i32) -> (i32, i32) {
    %c0_i32 = arith.constant 0 : i32
    %c0_i32_0 = arith.constant 0 : i32
    %c0_i32_1 = arith.constant 0 : i32
    return %c0_i32, %c0_i32_0 : i32, i32
  }
  func.func @transform_4(%arg0: i32) -> (i32, i32) {
    %c0_i32 = arith.constant 0 : i32
    %c0_i32_0 = arith.constant 0 : i32
    return %arg0, %c0_i32 : i32, i32
  }
}

</mosaic_0001>

<bundles_post_ra>
// kernel: tpu_custom_call.1
= control target key start
LH: loop header
LB: loop body
LE: loop exit
PB: predicated region body
PF: predicated region fallthrough
CT: control target
= control target key end

     0   :  { %s1134_s0 = inlined_call_operand.hbm [shape: f32[64,128], index: 0, kind: input, shape index: {}]   ;;  %s1135_s1 = inlined_call_operand.hbm [shape: f32[64,128], index: 1, kind: input, shape index: {}]   ;;  %s1136_s2 = inlined_call_operand.hbm [shape: f32[128,128], index: 2, kind: input, shape index: {}]   ;;  %s1137_s3 = inlined_call_operand.vmem [shape: f32[1,128], index: 3, kind: input, shape index: {}]   ;;  %s1138_s4 = inlined_call_operand.hbm [shape: f32[64,128], index: 4, kind: output, shape index: {}]  }
   0x1   :  { %1146 = sst [smem:[#allocation14_spill]] %s1134_s0 }
   0x2   :  { %1147 = sst [smem:[#allocation15_spill]] %s1136_s2 }
   0x3   :  { %9 = vsyncpa [#allocation3], 0 }
   0x4   :  { %11 = vsyncpa [#allocation3 + $0x1], 0 }
   0x5   :  { %12 = vsyncpa [#allocation6], 0 }
   0x6   :  { %14 = vsyncpa [#allocation6 + $0x1], 0 }
   0x7   :  { %15 = vsyncpa [#allocation4], 0 }
   0x8   :  { %17 = vsyncpa [#allocation4 + $0x1], 0  ;;  %s874_s15 = smov 0   ;;  %s876_s16 = smov 0  }
   0x9   :  { %s878_s17 = smov 0   ;;  %s880_s18 = smov 0  }
   0xa LB: > { %s895_s19 = sadd.s32 4294967295, %s839_s18   ;;  %s502_s20 = sadd.s32 4294967294, %s839_s18   ;;  %s839_s18 = sphi %s880_s18, %s1169_s18   ;;  %s835_s17 = sphi %s878_s17, %s1168_s17   ;;  %s831_s16 = sphi %s876_s16, %s1167_s16   ;;  %s827_s15 = sphi %s874_s15, %s1166_s15  }
   0xb   : > { %p43_p0 = scmp.ne.s32.totalorder %s831_s16, %s827_s15  ;;  %p1139_p1 = scmp.eq.s32.totalorder %s895_s19, 0 }
   0xc   : > { %p141_p3 = scmp.eq.s32.totalorder %s502_s20, 3  ;;  %p503_p5 = scmp.ge.s32.totalorder %s839_s18, 1 }
   0xd   : > { %p904_p4 = por %p1139_p1, %p43_p0  ;;  %p148_p7 = scmp.lt.s32.totalorder %s839_s18, 5 }
   0xe   : > { %p909_p6 = por %p141_p3, %p43_p0  ;;  %s841_s24 = smov [#allocation7]  }
   0xf   : > { %s1148_s21 = scalar_select %p904_p4, 1, 0 }
  0x10   : > { %s1149_s22 = scalar_select %p909_p6, 1, 0 }
  0x11   : > { %p914_p8 = pnand %p503_p5, %p148_p7  ;;  %s160_s25 = sshll.u32 %s841_s24, 4  ;;  %s161_s25 = int_to_ptr.vmem [resolvable:$true] %s160_s25 }
  0x12   : > { %s927_s27 = sadd.s32 1, %s839_s18   ;;  %s30_s28 = sadd.s32 1, %s835_s17 }
  0x13   : > { %s1150_s23 = scalar_select %p914_p8, 1, 0 }
  0x14   : > { %p621_p9 = pneg %p914_p8  ;;  %s27_s29 = ssub.s32 %s839_s18, %s927_s27 }
  0x15   : > { %s1152_s2 = sld [smem:[#allocation15_spill]] }
  0x16   : > { %p922_p10 = pnand %p621_p9, %p1139_p1 }
  0x18   : > { %p679_p12 = pneg %p922_p10 }
  0x1b   : > { %s677_s6 = scalar_lea.hbm %s1152_s2, 2048 }
  0x1c   : > { %p678_p11 = scmp.ne.s32.totalorder %s1152_s2, %s677_s6  ;;  %p684_p3 = scmp.lt.u32.totalorder %s677_s6, %s1152_s2 }
  0x1e   : > { %p680_p13 = pnand %p679_p12, %p678_p11 }
  0x20   : > { %p681_p0 = pneg %p680_p13 }
  0x22   : > { %p686_p5 = pnand %p684_p3, %p681_p0 }
  0x24   : > { %689 = shalt.err (!%p686_p5)
}
  0x25   : > { %s690_s11 = scalar_lea.vmem %s161_s25, 2048  ;;  %p698_p2 = scmp.lt.s32.totalorder %s161_s25, %s161_s25 }
  0x26   : > { %p691_p7 = scmp.ne.s32.totalorder %s161_s25, %s690_s11  ;;  %p699_p6 = scmp.lt.s32.totalorder %s690_s11, %s690_s11 }
  0x28   : > { %p693_p9 = pnand %p691_p7, %p679_p12  ;;  %p700_p4 = por %p699_p6, %p698_p2 }
  0x2a   : > { %p694_p1 = pneg %p693_p9 }
  0x2c   : > { %p701_p8 = pnand %p700_p4, %p694_p1 }
  0x2e   : > { %704 = shalt.err (!%p701_p8)
}
  0x2f   : > { %s1142_s12 = smov 128   ;;  %s1144_s13 = smov 8  }
  0x30   : > { %624 = dma.hbm_to_vmem [thread:$0]  (!%p922_p10), %s1152_s2, 2048, %s161_s25, [#allocation6], %s1142_s12, %s1142_s12, %s1144_s13  }
  0x31   : > { %p28_p1 = scmp.eq.s32.totalorder %s27_s29, 0  ;;  %p37_p2 = scmp.ne.s32.totalorder %s835_s17, %s831_s16 }
  0x32   : > { %p38_p4 = scmp.eq.s32.totalorder %s839_s18, 0  ;;  %p637_p6 = scmp.lt.s32.totalorder %s839_s18, 4 }
  0x33   : > { %s956_s24 = scalar_select %p28_p1, %s835_s17, %s30_s28  }
  0x34   : > { %p39_p8 = por %p38_p4, %p37_p2  ;;  %p1154_p11 = scmp.eq.s32.totalorder %s895_s19, 3 }
  0x35   : > { %1153 = sst [smem:[#allocation13_spill]] %s956_s24  ;;  %s177_s26 = sand.u32 1, %s835_s17  }
  0x36   : > { %p960_p12 = por %p1154_p11, %p37_p2  ;;  %s523_s5 = sshll.u32 %s839_s18, 8 }
  0x37   : > { %s966_s6 = sshll.u32 %s177_s26, 4  ;;  %s1156_s0 = sld [smem:[#allocation14_spill]] }
  0x38   : > { %s181_s28 = scalar_lea.vmem [#allocation2], %s966_s6  ;;  %p974_p10 = pnand %p637_p6, %p39_p8 }
  0x39   : > { %s188_s29 = sshll.u32 %s181_s28, 4  ;;  %s983_s14 = scalar_lea.hbm %s1135_s1, %s523_s5  ;;  %s978_s29 = int_to_ptr.vmem [resolvable:$true] %s188_s29 }
  0x3a   : > { %s985_s20 = scalar_lea.sflag [#allocation3], %s177_s26  ;;  %p707_p0 = pneg %p974_p10 }
  0x3d   : > { %s971_s25 = scalar_lea.hbm %s1156_s0, %s523_s5  ;;  %s710_s12 = scalar_lea.hbm %s1156_s0, 1024 }
  0x3e   : > { %s705_s7 = scalar_lea.hbm %s971_s25, 256  ;;  %p711_p7 = scmp.lt.u32.totalorder %s971_s25, %s1156_s0 }
  0x3f   : > { %p706_p13 = scmp.ne.s32.totalorder %s971_s25, %s705_s7  ;;  %p712_p9 = scmp.lt.u32.totalorder %s710_s12, %s705_s7 }
  0x40   : > { %p714_p2 = scmp.lt.u32.totalorder %s705_s7, %s971_s25 }
  0x41   : > { %p708_p3 = pnand %p707_p0, %p706_p13  ;;  %p713_p1 = por %p712_p9, %p711_p7 }
  0x43   : > { %p709_p5 = pneg %p708_p3  ;;  %p715_p4 = por %p714_p2, %p713_p1 }
  0x45   : > { %p716_p6 = pnand %p715_p4, %p709_p5 }
  0x47   : > { %719 = shalt.err (!%p716_p6)
}
  0x48   : > { %s720_s26 = scalar_lea.vmem %s978_s29, 256  ;;  %s844_s5 = smov [#allocation2]  }
  0x49   : > { %p721_p8 = scmp.ne.s32.totalorder %s978_s29, %s720_s26  ;;  %s725_s10 = sshll.u32 %s844_s5, 4  ;;  %s726_s10 = int_to_ptr.vmem [resolvable:$false] %s725_s10 }
  0x4a   : > { %s727_s2 = scalar_lea.vmem %s726_s10, 512  ;;  %p728_p3 = scmp.lt.s32.totalorder %s978_s29, %s726_s10 }
  0x4b   : > { %p723_p11 = pnand %p721_p8, %p707_p0  ;;  %p729_p7 = scmp.lt.s32.totalorder %s727_s2, %s720_s26 }
  0x4d   : > { %p724_p13 = pneg %p723_p11  ;;  %p730_p9 = por %p729_p7, %p728_p3 }
  0x4f   : > { %p731_p1 = pnand %p730_p9, %p724_p13 }
  0x51   : > { %734 = shalt.err (!%p731_p1)
}
  0x52   : > { %s1158_s12 = smov 8   ;;  %s1159_s13 = smov 128  }
  0x53   : > { %628 = dma.hbm_to_vmem [thread:$0]  (!%p974_p10), %s971_s25, 256, %s978_s29, %s985_s20, %s1159_s13, %s1159_s13, %s1158_s12  }
  0x54   : > { %s202_s11 = scalar_lea.vmem [#allocation5], %s966_s6  ;;  %s198_s8 = sand.u32 1, %s839_s18  }
  0x55   : > { %s209_s7 = sshll.u32 %s202_s11, 4  ;;  %s1020_s28 = scalar_lea.sflag [#allocation6], %s198_s8  ;;  %s1018_s7 = int_to_ptr.vmem [resolvable:$true] %s209_s7 }
  0x56   : > { %s735_s26 = scalar_lea.hbm %s983_s14, 256  ;;  %s740_s2 = scalar_lea.hbm %s1135_s1, 1024 }
  0x57   : > { %p736_p5 = scmp.ne.s32.totalorder %s983_s14, %s735_s26  ;;  %p741_p6 = scmp.lt.u32.totalorder %s983_s14, %s1135_s1 }
  0x58   : > { %p742_p8 = scmp.lt.u32.totalorder %s740_s2, %s735_s26  ;;  %p744_p13 = scmp.lt.u32.totalorder %s735_s26, %s983_s14 }
  0x59   : > { %p738_p2 = pnand %p736_p5, %p707_p0 }
  0x5a   : > { %p743_p11 = por %p742_p8, %p741_p6 }
  0x5b   : > { %p739_p4 = pneg %p738_p2 }
  0x5c   : > { %p745_p3 = por %p744_p13, %p743_p11 }
  0x5e   : > { %p746_p7 = pnand %p745_p3, %p739_p4 }
  0x60   : > { %749 = shalt.err (!%p746_p7)
}
  0x61   : > { %s750_s6 = scalar_lea.vmem %s1018_s7, 256  ;;  %s845_s25 = smov [#allocation5]  }
  0x62   : > { %p751_p9 = scmp.ne.s32.totalorder %s1018_s7, %s750_s6  ;;  %s755_s29 = sshll.u32 %s845_s25, 4  ;;  %s756_s29 = int_to_ptr.vmem [resolvable:$false] %s755_s29 }
  0x63   : > { %s757_s0 = scalar_lea.vmem %s756_s29, 512  ;;  %p758_p2 = scmp.lt.s32.totalorder %s1018_s7, %s756_s29 }
  0x64   : > { %p753_p1 = pnand %p751_p9, %p707_p0  ;;  %p759_p6 = scmp.lt.s32.totalorder %s757_s0, %s750_s6 }
  0x66   : > { %p754_p5 = pneg %p753_p1  ;;  %p760_p8 = por %p759_p6, %p758_p2 }
  0x68   : > { %p761_p11 = pnand %p760_p8, %p754_p5 }
  0x6a   : > { %764 = shalt.err (!%p761_p11)
}
  0x6b   : > { %631 = dma.hbm_to_vmem [thread:$0]  (!%p974_p10), %s983_s14, 256, %s1018_s7, %s1020_s28, %s1159_s13, %s1159_s13, %s1158_s12  }
  0x6c   : > { %p1160_p0 = scmp.ne.s32.totalorder %s1150_s23, 0 }
  0x6d   : > { %s1052_s24 = sand.u32 (!%p1160_p0), 1, %s831_s16   ;;  %p1161_p4 = scmp.ne.s32.totalorder (!%p1160_p0), %s1148_s21, 0 }
  0x6e   : > { %221 = sbr.rel (%p1160_p0) target bundleno = 393 (0x189), region = 36  ;;  %s1055_s20 = sshll.u32 (!%p1160_p0), %s1052_s24, 4 }
  0x6f   : > { %s224_s9 = scalar_lea.sflag (!%p1160_p0), [#allocation3], %s1052_s24  ;;  %s227_s11 = scalar_lea.vmem (!%p1160_p0), [#allocation2], %s1055_s20 }
  0x75   : > { %810 = dma.done.wait (%p1161_p4), %s224_s9, 256  }
  0x76   : > { %812 = vsyncadd (%p1161_p4), %s224_s9, 4294967040  ;;  %s232_s23 = sand.u32 1, %s895_s19   ;;  %s236_s12 = scalar_lea.vmem [#allocation5], %s1055_s20 }
  0x77   : > { %s233_s14 = scalar_lea.sflag [#allocation6], %s232_s23 }
  0x78   : > { %814 = dma.done.wait (%p1161_p4), %s233_s14, 256  }
  0x79   : > { %816 = vsyncadd (%p1161_p4), %s233_s14, 4294967040  ;;  %p1162_p10 = scmp.eq.s32.totalorder %s895_s19, 0 }
  0x7b   : > { %818 = dma.done.wait (%p1162_p10), [#allocation6], 2048   ;;  %p1163_p13 = pmov %p1162_p10 }
  0x7c   : > { %v277_v0 = vld [vmem:[#allocation7] sm:$0xff]  ;;  %v278_v1 = vld [vmem:[#allocation7 + $0x8] sm:$0xff]  ;;  %v279_v2 = vld [vmem:[#allocation7 + $0x10] sm:$0xff]  ;;  %s269_s21 = scalar_lea.vmem [#allocation8], %s1055_s20  ;;  %s525_s28 = sshll.u32 %s895_s19, 8 }
  0x7d   : > { %820 = vsyncadd (%p1163_p13), [#allocation6], 4294965248  ;;  %v579_v3 = vpack.c.bf16 %v278_v1, %v277_v0  ;;  %v280_v4 = vld [vmem:[#allocation7 + $0x18] sm:$0xff]  ;;  %v281_v6 = vld [vmem:[#allocation7 + $0x20] sm:$0xff]  ;;  %s397_s13 = sshll.u32 %s269_s21, 4  ;;  %s1091_s10 = scalar_lea.hbm %s1138_s4, %s525_s28  ;;  %s1086_s13 = int_to_ptr.vmem [resolvable:$true] %s397_s13 }
  0x7e   : > { %v583_v5 = vpack.c.bf16 %v280_v4, %v279_v2  ;;  %v282_v7 = vld [vmem:[#allocation7 + $0x28] sm:$0xff]  ;;  %v273_v9 = vld [vmem:[%s236_s12] sm:$0xff]  ;;  %v284_v11 = vld [vmem:[#allocation7 + $0x38] sm:$0xff]  ;;  %s384_s2 = scalar_lea.sflag [#allocation4], %s1052_s24  ;;  %s765_s6 = scalar_lea.vmem %s1086_s13, 256 }
  0x7f   : > { %580 = vmatprep.subr.bf16.mxu0 %v579_v3  ;;  %v587_v8 = vpack.c.bf16 %v282_v7, %v281_v6  ;;  %v283_v10 = vld [vmem:[#allocation7 + $0x30] sm:$0xff]  ;;  %576 = vmatprep.mubr.f32.mxu0 %v273_v9  ;;  %v285_v13 = vld [vmem:[#allocation7 + $0x40] sm:$0xff]  ;;  %v286_v14 = vld [vmem:[#allocation7 + $0x48] sm:$0xff]  ;;  %p766_p3 = scmp.ne.s32.totalorder %s1086_s13, %s765_s6  ;;  %s846_s19 = smov [#allocation8]  }
  0x80   : > { %582 = vmatpush3.bf16.msra.mxu0 %v579_v3  ;;  %v591_v12 = vpack.c.bf16 %v284_v11, %v283_v10  ;;  %v595_v15 = vpack.c.bf16 %v286_v14, %v285_v13  ;;  %v287_v16 = vld [vmem:[#allocation7 + $0x50] sm:$0xff]  ;;  %v288_v17 = vld [vmem:[#allocation7 + $0x58] sm:$0xff]  ;;  %v289_v19 = vld [vmem:[#allocation7 + $0x60] sm:$0xff]  ;;  %s769_s25 = sshll.u32 %s846_s19, 4  ;;  %s770_s25 = int_to_ptr.vmem [resolvable:$false] %s769_s25 }
  0x81   : > { %584 = vmatprep.subr.bf16.mxu0 %v583_v5  ;;  %v599_v18 = vpack.c.bf16 %v288_v17, %v287_v16  ;;  %v290_v20 = vld [vmem:[#allocation7 + $0x68] sm:$0xff]  ;;  %v291_v22 = vld [vmem:[#allocation7 + $0x70] sm:$0xff]  ;;  %v292_v23 = vld [vmem:[#allocation7 + $0x78] sm:$0xff]  ;;  %p767_p7 = pnand %p766_p3, %p960_p12  ;;  %s771_s29 = scalar_lea.vmem %s770_s25, 512 }
  0x82   : > { %v603_v21 = vpack.c.bf16 %v290_v20, %v289_v19  ;;  %v607_v24 = vpack.c.bf16 %v292_v23, %v291_v22  ;;  %v274_v25 = vld [vmem:[%s236_s12 + $0x8] sm:$0xff]  ;;  %v275_v27 = vld [vmem:[%s227_s11] sm:$0xff]  ;;  %p772_p1 = scmp.lt.s32.totalorder %s1086_s13, %s770_s25  ;;  %p773_p5 = scmp.lt.s32.totalorder %s771_s29, %s765_s6 }
  0x83   : > { %v276_v26 = vld [vmem:[%s227_s11 + $0x8] sm:$0xff]  ;;  %v517_v31 = vld [vmem:[%s1137_s3] ss:$0 sm:$0xff]  ;;  %p768_p9 = pneg %p767_p7 }
  0x84   : > { %586 = vmatpush3.bf16.msra.mxu0 %v583_v5  ;;  %p774_p2 = por %p773_p5, %p772_p1 }
  0x85   : > { %588 = vmatprep.subr.bf16.mxu0 %v587_v8 }
  0x86   : > { %p775_p6 = pnand %p774_p2, %p768_p9 }
  0x88   : > { %590 = vmatpush3.bf16.msra.mxu0 %v587_v8 }
  0x89   : > { %592 = vmatprep.subr.bf16.mxu0 %v591_v12 }
  0x8c   : > { %594 = vmatpush3.bf16.msra.mxu0 %v591_v12 }
  0x8d   : > { %596 = vmatprep.subr.bf16.mxu0 %v595_v15 }
  0x90   : > { %598 = vmatpush3.bf16.msra.mxu0 %v595_v15 }
  0x91   : > { %600 = vmatprep.subr.bf16.mxu0 %v599_v18 }
  0x94   : > { %602 = vmatpush3.bf16.msra.mxu0 %v599_v18 }
  0x95   : > { %604 = vmatprep.subr.bf16.mxu0 %v603_v21 }
  0x98   : > { %606 = vmatpush3.bf16.msra.mxu0 %v603_v21 }
  0x99   : > { %608 = vmatprep.subr.bf16.mxu0 %v607_v24 }
  0x9c   : > { %610 = vmatpush3.bf16.msra.mxu0 %v607_v24 }
  0x9f   : > { %577 = vmatmul.mubr.f32.vlgmr.msra.gmra.mrb[0].mxu0 %v274_v25 }
 0x172   : > { %v578_v28 = vpop.f32.mrb[0].mxu0 }
 0x173   : > { %v369_v29 = vmul.f32 %v578_v28, %v276_v26  ;;  %v359_v30 = vpop.f32.mrb[1].mxu0 }
 0x174   : > { %v368_v32 = vmul.f32 %v359_v30, %v275_v27 }
 0x175   : > { %v371_v33 = vadd.f32 %v369_v29, %v274_v25 }
 0x176   : > { %v370_v34 = vadd.f32 %v368_v32, %v273_v9 }
 0x177   : > { %v380_v35 = vadd.f32 %v517_v31, %v371_v33 }
 0x178   : > { %v379_v36 = vadd.f32 %v517_v31, %v370_v34 }
 0x179   : > { %382 = vst [vmem:[%s269_s21 + $0x8] sm:$0xff] %v380_v35 }
 0x17a   : > { %381 = vst [vmem:[%s269_s21] sm:$0xff] %v379_v36 }
 0x17b   : > { %778 = shalt.err (!%p775_p6)
}
 0x17c   : > { %s779_s0 = scalar_lea.hbm %s1091_s10, 256  ;;  %s783_s11 = scalar_lea.hbm %s1138_s4, 1024 }
 0x17d   : > { %p780_p8 = scmp.ne.s32.totalorder %s1091_s10, %s779_s0  ;;  %p784_p4 = scmp.lt.u32.totalorder %s1091_s10, %s1138_s4 }
 0x17e   : > { %p785_p10 = scmp.lt.u32.totalorder %s783_s11, %s779_s0  ;;  %p787_p3 = scmp.lt.u32.totalorder %s779_s0, %s1091_s10 }
 0x17f   : > { %p781_p11 = pnand %p780_p8, %p960_p12 }
 0x180   : > { %p786_p13 = por %p785_p10, %p784_p4 }
 0x181   : > { %p782_p0 = pneg %p781_p11 }
 0x182   : > { %p788_p7 = por %p787_p3, %p786_p13 }
 0x184   : > { %p789_p9 = pnand %p788_p7, %p782_p0 }
 0x186   : > { %792 = shalt.err (!%p789_p9)
}
 0x187   : > { %s847_s12 = smov 128   ;;  %s848_s21 = smov 8  }
 0x188   : > { %619 = dma.vmem_to_hbm [thread:$0]  (%p960_p12), %s1086_s13, 256, %s1091_s10, %s384_s2, %s847_s12, %s847_s12, %s848_s21  }
 0x189 PF: > { %p639_p1 = scmp.ge.s32.totalorder %s839_s18, 2  ;;  %s412_s7 = sand.u32 1, %s827_s15  }
 0x18a   : > { %p1164_p5 = scmp.ne.s32.totalorder %s1149_s22, 0  ;;  %s413_s8 = scalar_lea.sflag [#allocation4], %s412_s7 }
 0x18c   : > { %p633_p2 = pnand %p639_p1, %p1164_p5 }
 0x18e   : > { %822 = dma.done.wait (!%p633_p2), %s413_s8, 256  }
 0x18f   : > { %824 = vsyncadd (!%p633_p2), %s413_s8, 4294967040  ;;  %s1165_s28 = sld [smem:[#allocation13_spill]]  ;;  %p20_p6 = scmp.ge.s32.totalorder %s927_s27, 6  }
 0x190   : > { %s1166_s15 = smov %s831_s16  ;;  %s1167_s16 = smov %s835_s17 }
 0x191   : > { %s1169_s18 = smov %s927_s27  ;;  %22 = sbr.rel (!%p20_p6) target bundleno = 10 (0xa), region = 98 }
 0x195   : > { %s1168_s17 = smov %s1165_s28 }
 0x198   :  { %418 = vsyncpa [#allocation3], 1 }
 0x199   :  { %420 = vsyncpa [#allocation3 + $0x1], 1 }
 0x19a   :  { %421 = vsyncpa [#allocation6], 1 }
 0x19b   :  { %423 = vsyncpa [#allocation6 + $0x1], 1 }
 0x19c   :  { %424 = vsyncpa [#allocation4], 1 }
 0x19d   :  { %426 = vsyncpa [#allocation4 + $0x1], 1 }

</bundles_post_ra>
